<compile_context>
chip_gen: v6e
topology: v6e:2x2x1
jax: 0.10.0
libtpu: 0.0.40
codegen_flags: <defaults>
</compile_context>

<pallas_src>
import functools

import jax
import jax.numpy as jnp
from jax.experimental import pallas as pl
from jax.experimental.pallas import tpu as pltpu


def _round_up(x, m):
    return ((x + m - 1) // m) * m


def _vmem_capacity_bytes(default=64 * 1024 * 1024):
    """Physical VMEM per TensorCore; conservative default if the query fails."""
    try:
        info = pltpu.get_tpu_info()
        cap = getattr(info, "vmem_capacity_bytes", None)
        if cap:
            return int(cap)
    except Exception:
        pass
    return default


def _row_sum(v, ones, use_mxu):
    """Row-wise sum over the class axis.

    use_mxu=True offloads the reduction to the (otherwise idle) MXU by
    multiplying against a (tile_c, 128) f32 ones matrix and reading lane 0.
    For narrow class tiles a plain VALU/XLU reduce is cheaper.
    """
    if use_mxu:
        full = jnp.dot(v, ones, preferred_element_type=jnp.float32,
                       precision=jax.lax.Precision.HIGHEST)
        return full[:, :1]
    return jnp.sum(v, axis=-1, keepdims=True)


def _focal_ce_partial_kernel(logits_ref, target_ref, ones_ref, out_ref, *scratch,
                             n_valid, n_classes, tile_n, tile_c,
                             online, mask_rows, mask_cols, use_mxu):
    """Partial cross-entropy sum for one (tile_n, tile_c) block.

    Grid = (n_tiles, c_tiles); the class axis is "arbitrary" (reduction).
    online=True  -> per-row online logsumexp across class tiles (VMEM scratch).
    online=False -> single class tile, no scratch.
    Output block (1, 8, 128) is filled with this N-tile's partial CE sum
    (lane/sublane-dense, unmasked store); written once on the last class tile.
    """
    i = pl.program_id(0)
    j = pl.program_id(1)

    x = logits_ref[...].astype(jnp.float32)          # (tile_n, tile_c) f32
    t = target_ref[...]                              # (tile_n, 1) int32
    ones = ones_ref[...]                             # (tile_c, 128) f32

    col = jax.lax.broadcasted_iota(jnp.int32, x.shape, dimension=1)
    if online:
        col = col + j * tile_c
    if mask_cols:
        # Ragged last class tile: neutralize padding columns (static gate).
        x = jnp.where(col < n_classes, x, -jnp.inf)

    tgt_mask = col == t                              # one-hot mask, built once

    def _masked_rows(ce):
        # Ragged last row tile: drop padded rows (static gate; runs only in
        # the per-N-tile epilogue so full tiles never pay for it).
        if mask_rows:
            row = jax.lax.broadcasted_iota(jnp.int32, ce.shape, 0) + i * tile_n
            ce = jnp.where(row < n_valid, ce, 0.0)
        return ce

    if online:
        m_sc, l_sc, tgt_sc = scratch

        @pl.when(j == 0)
        def _init():
            m_sc[...] = jnp.full(m_sc.shape, -jnp.inf, jnp.float32)
            l_sc[...] = jnp.zeros(l_sc.shape, jnp.float32)
            tgt_sc[...] = jnp.zeros(tgt_sc.shape, jnp.float32)

        m_old = m_sc[...]
        m_new = jnp.maximum(m_old, jnp.max(x, axis=-1, keepdims=True))
        e = jnp.exp(x - m_new)                       # one exp per element
        l_sc[...] = jnp.exp(m_old - m_new) * l_sc[...] + _row_sum(e, ones, use_mxu)
        tgt_sc[...] = tgt_sc[...] + _row_sum(jnp.where(tgt_mask, x, 0.0), ones, use_mxu)
        m_sc[...] = m_new

        @pl.when(j == pl.num_programs(1) - 1)
        def _finish():
            ce = m_sc[...] + jnp.log(l_sc[...]) - tgt_sc[...]
            out_ref[...] = jnp.full(out_ref.shape, jnp.sum(_masked_rows(ce)),
                                    dtype=jnp.float32)
    else:
        m = jnp.max(x, axis=-1, keepdims=True)
        e = jnp.exp(x - m)
        lse = m + jnp.log(_row_sum(e, ones, use_mxu))
        tgt = _row_sum(jnp.where(tgt_mask, x, 0.0), ones, use_mxu)
        ce = lse - tgt
        out_ref[...] = jnp.full(out_ref.shape, jnp.sum(_masked_rows(ce)),
                                dtype=jnp.float32)


def focal_loss(logits, target, gamma=0.0, eps=1e-07, tile_n=None, tile_c=None):
    """Pallas TPU implementation of FocalLoss.forward.

    logits: (N, C) float array of unnormalized scores (f32 or bf16 — streamed
            in its native dtype).
    target: (N,) int array of class indices.
    Returns: scalar float32 loss.
    """
    del eps  # defined by the PyTorch module but unused in forward
    N, C = logits.shape
    t2 = target.astype(jnp.int32).reshape(N, 1)

    itemsize = jnp.dtype(logits.dtype).itemsize
    sublane = max(8, 32 // itemsize)          # f32 -> 8, bf16 -> 16, int8 -> 32

    # Generation-aware budgets: per-buffer logits tile (double-buffered by the
    # BlockSpec pipeline) + scoped VMEM limit.  128 MiB parts (v5e/v6e) get the
    # big tiles; v7x (64 MiB per TC) stays conservative.
    cap = _vmem_capacity_bytes()
    vmem_limit = min(96 * 1024 * 1024, max(cap * 3 // 4, 32 * 1024 * 1024))
    logits_budget = 8 * 1024 * 1024 if vmem_limit >= 96 * 1024 * 1024 else 4 * 1024 * 1024

    # Class-axis tiling: keep C untiled while >= 256 rows still fit the budget;
    # otherwise stream C in 128-aligned chunks with an online logsumexp.
    min_rows = 256
    max_tile_c = max(128, (logits_budget // (min_rows * itemsize)) // 128 * 128)
    if tile_c is None:
        tile_c = C if C <= max_tile_c else max_tile_c
    tile_c = int(tile_c)
    if tile_c >= C:
        tile_c = C
        num_c_tiles = 1
    else:
        tile_c = max(128, (tile_c // 128) * 128)   # interior blocks must be lane-aligned
        num_c_tiles = pl.cdiv(C, tile_c)
    online = num_c_tiles > 1
    mask_cols = online and (C % tile_c != 0)
    use_mxu = tile_c >= 256                        # MXU reduce only pays off for wide tiles

    if tile_n is None:
        tile_n = logits_budget // max(tile_c * itemsize, 1)
        if use_mxu:
            # Also bound the (tile_n, 128) f32 matmul outputs.
            tile_n = min(tile_n, logits_budget // 512)
    tile_n = max(sublane, (int(tile_n) // sublane) * sublane)
    tile_n = min(tile_n, _round_up(N, sublane))
    num_n_tiles = pl.cdiv(N, tile_n)
    mask_rows = (N % tile_n) != 0

    ones = jnp.ones((tile_c, 128), jnp.float32)    # resident RHS for the MXU row-reduce

    kernel = functools.partial(
        _focal_ce_partial_kernel,
        n_valid=N, n_classes=C, tile_n=tile_n, tile_c=tile_c,
        online=online, mask_rows=mask_rows, mask_cols=mask_cols, use_mxu=use_mxu)

    scratch_shapes = []
    if online:
        # Per-row running max / sum-exp / target-logit for the online logsumexp.
        scratch_shapes = [pltpu.VMEM((tile_n, 1), jnp.float32)] * 3

    partials = pl.pallas_call(
        kernel,
        out_shape=jax.ShapeDtypeStruct((num_n_tiles, 8, 128), jnp.float32),
        grid=(num_n_tiles, num_c_tiles),
        in_specs=[
            pl.BlockSpec((tile_n, tile_c), lambda i, j: (i, j)),   # logits, native dtype
            pl.BlockSpec((tile_n, 1), lambda i, j: (i, 0)),        # int32 targets
            pl.BlockSpec((tile_c, 128), lambda i, j: (0, 0)),      # resident ones matrix
        ],
        out_specs=pl.BlockSpec((1, 8, 128), lambda i, j: (i, 0, 0)),
        scratch_shapes=scratch_shapes,
        compiler_params=pltpu.CompilerParams(
            dimension_semantics=("parallel", "arbitrary"),
            vmem_limit_bytes=vmem_limit,
        ),
    )(logits, t2, ones)

    # Scalar epilogue in the wrapper: mean CE + focal modulation.
    logp = partials[:, 0, 0].sum() / jnp.float32(N)
    gamma = float(gamma)
    if gamma == 0.0:
        return logp
    p = jnp.exp(-logp)
    base = jnp.maximum(1.0 - p, 0.0)          # guard rounding when mean CE ~ 0
    if gamma == 2.0:
        mod = base * base
    elif gamma == 1.0:
        mod = base
    else:
        mod = base ** gamma
    return mod * logp


def _focal_loss_ref(logits, target, gamma=0.0):
    # Pure-JAX reference (mirrors torch.nn.CrossEntropyLoss + focal term).
    logits = logits.astype(jnp.float32)
    logz = jax.nn.logsumexp(logits, axis=-1)
    tgt = jnp.take_along_axis(logits, target[:, None].astype(jnp.int32), axis=-1)[:, 0]
    logp = jnp.mean(logz - tgt)
    p = jnp.exp(-logp)
    return (1.0 - p) ** gamma * logp


if __name__ == "__main__":
    key = jax.random.PRNGKey(0)
    k1, k2, k3, k4, k5, k6 = jax.random.split(key, 6)
    gamma = 2.0

    # Case 1: small f32 problem (batch=8, classes=32): single tile, VALU reduce.
    N, C = 8, 32
    logits = jax.random.normal(k1, (N, C), dtype=jnp.float32)
    target = jax.random.randint(k2, (N,), 0, C, dtype=jnp.int32)
    loss = focal_loss(logits, target, gamma=gamma)
    jax.block_until_ready(loss)
    ref = _focal_loss_ref(logits, target, gamma=gamma)
    assert jnp.allclose(loss, ref, rtol=1e-4, atol=1e-5), (loss, ref)

    # Case 2: multi-row-tile grid with a ragged last tile, native bf16 streaming
    # and the MXU row-reduce path (tile_c = 256).
    N2, C2 = 300, 256
    logits2 = jax.random.normal(k3, (N2, C2), dtype=jnp.float32).astype(jnp.bfloat16)
    target2 = jax.random.randint(k4, (N2,), 0, C2, dtype=jnp.int32)
    loss2 = focal_loss(logits2, target2, gamma=gamma, tile_n=64)
    jax.block_until_ready(loss2)
    ref2 = _focal_loss_ref(logits2, target2, gamma=gamma)
    assert jnp.allclose(loss2, ref2, rtol=2e-2, atol=2e-2), (loss2, ref2)

    # Case 3: force the online class-tiled path (ragged C tile + ragged N tile).
    N3, C3 = 100, 300
    logits3 = jax.random.normal(k5, (N3, C3), dtype=jnp.float32)
    target3 = jax.random.randint(k6, (N3,), 0, C3, dtype=jnp.int32)
    loss3 = focal_loss(logits3, target3, gamma=gamma, tile_n=32, tile_c=128)
    jax.block_until_ready(loss3)
    ref3 = _focal_loss_ref(logits3, target3, gamma=gamma)
    assert jnp.allclose(loss3, ref3, rtol=1e-4, atol=1e-5), (loss3, ref3)

    print("KERNEL_OK")
</pallas_src>

<mosaic_0001>
module attributes {stable_mosaic.version = 11 : i64} {
  func.func @_focal_ce_partial_kernel(%arg0: i32, %arg1: i32, %arg2: memref<8x32xf32, #tpu.memory_space<vmem>>, %arg3: memref<8x1xi32, #tpu.memory_space<vmem>>, %arg4: memref<32x128xf32, #tpu.memory_space<vmem>>, %arg5: memref<1x8x128xf32, #tpu.memory_space<vmem>>) attributes {dimension_semantics = [#tpu.dimension_semantics<parallel>, #tpu.dimension_semantics<arbitrary>], iteration_bounds = array<i64: 1, 1>, scalar_prefetch = 0 : i64, scratch_operands = 0 : i64, tpu.core_type = #tpu.core_type<tc>, window_params = [{transform_indices = @transform_0, window_bounds = array<i64: 8, 32>}, {transform_indices = @transform_1, window_bounds = array<i64: 8, 1>}, {pipeline_mode = #tpu.pipeline_mode<synchronous>, transform_indices = @transform_2, window_bounds = array<i64: 32, 128>}, {transform_indices = @transform_3, window_bounds = array<i64: 1, 8, 128>}]} {
    %c0 = arith.constant 0 : index
    %c0_0 = arith.constant 0 : index
    %0 = vector.load %arg2[%c0, %c0_0] : memref<8x32xf32, #tpu.memory_space<vmem>>, vector<8x32xf32>
    %c0_1 = arith.constant 0 : index
    %c0_2 = arith.constant 0 : index
    %1 = vector.load %arg3[%c0_1, %c0_2] : memref<8x1xi32, #tpu.memory_space<vmem>>, vector<8x1xi32>
    %2 = tpu.iota {dimensions = array<i32: 1>} : vector<8x32xi32>
    %3 = vector.broadcast %1 : vector<8x1xi32> to vector<8x32xi32>
    %4 = arith.cmpi eq, %2, %3 : vector<8x32xi32>
    %cst = arith.constant dense<0xFF800000> : vector<8xf32>
    %5 = vector.multi_reduction <maximumf>, %0, %cst [1] : vector<8x32xf32> to vector<8xf32>
    %6 = vector.shape_cast %5 : vector<8xf32> to vector<8x1xf32>
    %7 = vector.broadcast %6 : vector<8x1xf32> to vector<8x32xf32>
    %8 = arith.subf %0, %7 : vector<8x32xf32>
    %9 = math.exp %8 : vector<8x32xf32>
    %cst_3 = arith.constant dense<0.000000e+00> : vector<8xf32>
    %10 = vector.multi_reduction <add>, %9, %cst_3 [1] : vector<8x32xf32> to vector<8xf32>
    %11 = vector.shape_cast %10 : vector<8xf32> to vector<8x1xf32>
    %12 = math.log %11 : vector<8x1xf32>
    %13 = arith.addf %6, %12 : vector<8x1xf32>
    %cst_4 = arith.constant 0.000000e+00 : f32
    %14 = vector.broadcast %cst_4 : f32 to vector<8x32xf32>
    %15 = arith.select %4, %0, %14 : vector<8x32xi1>, vector<8x32xf32>
    %cst_5 = arith.constant dense<0.000000e+00> : vector<8xf32>
    %16 = vector.multi_reduction <add>, %15, %cst_5 [1] : vector<8x32xf32> to vector<8xf32>
    %17 = vector.shape_cast %16 : vector<8xf32> to vector<8x1xf32>
    %18 = arith.subf %13, %17 : vector<8x1xf32>
    %19 = vector.shape_cast %18 : vector<8x1xf32> to vector<1x8x1xf32>
    %cst_6 = arith.constant dense<0.000000e+00> : vector<1xf32>
    %20 = vector.multi_reduction <add>, %19, %cst_6 [1, 2] : vector<1x8x1xf32> to vector<1xf32>
    %21 = vector.shape_cast %20 : vector<1xf32> to vector<1x1x1xf32>
    %22 = vector.extract %21[0, 0, 0] : f32 from vector<1x1x1xf32>
    %23 = vector.broadcast %22 : f32 to vector<1x8x128xf32>
    %c0_7 = arith.constant 0 : index
    %c0_8 = arith.constant 0 : index
    %c0_9 = arith.constant 0 : index
    %24 = vector.load %arg5[%c0_7, %c0_8, %c0_9] : memref<1x8x128xf32, #tpu.memory_space<vmem>>, vector<1x8x128xf32>
    tpu.vector_store %arg5[%c0_7, %c0_8, %c0_9], %23 {strides = array<i32>} : memref<1x8x128xf32, #tpu.memory_space<vmem>>, vector<1x8x128xf32>,
    return
  }
  func.func @transform_0(%arg0: i32, %arg1: i32) -> (i32, i32) {
    %c0_i32 = arith.constant 0 : i32
    return %arg0, %arg1 : i32, i32
  }
  func.func @transform_1(%arg0: i32, %arg1: i32) -> (i32, i32) {
    %c0_i32 = arith.constant 0 : i32
    %c0_i32_0 = arith.constant 0 : i32
    return %arg0, %c0_i32 : i32, i32
  }
  func.func @transform_2(%arg0: i32, %arg1: i32) -> (i32, i32) {
    %c0_i32 = arith.constant 0 : i32
    %c0_i32_0 = arith.constant 0 : i32
    %c0_i32_1 = arith.constant 0 : i32
    return %c0_i32, %c0_i32_0 : i32, i32
  }
  func.func @transform_3(%arg0: i32, %arg1: i32) -> (i32, i32, i32) {
    %c0_i32 = arith.constant 0 : i32
    %c0_i32_0 = arith.constant 0 : i32
    %c0_i32_1 = arith.constant 0 : i32
    return %arg0, %c0_i32, %c0_i32_0 : i32, i32, i32
  }
}

</mosaic_0001>

<bundles_post_ra>
// kernel: tpu_custom_call.1
= control target key start
LH: loop header
LB: loop body
LE: loop exit
PB: predicated region body
PF: predicated region fallthrough
CT: control target
= control target key end

     0   :  { %8 = vsyncpa [#allocation3], 0  ;;  %s179_s0 = inlined_call_operand.vmem [shape: f32[8,32], index: 0, kind: input, shape index: {}]   ;;  %s180_s1 = inlined_call_operand.vmem [shape: s32[8,1], index: 1, kind: input, shape index: {}]   ;;  %s181_s2 = inlined_call_operand.hbm [shape: f32[32,128], index: 2, kind: input, shape index: {}]   ;;  %s182_s3 = inlined_call_operand.hbm [shape: f32[1,8,128], index: 3, kind: output, shape index: {}]  }
   0x1   :  { %9 = vsyncpa [#allocation4], 0  ;;  %s139_s12 = smov [#allocation2]  }
   0x2   :  { %s19_s13 = sshll.u32 %s139_s12, 4  ;;  %s20_s13 = int_to_ptr.vmem [resolvable:$true] %s19_s13 }
   0x3   :  { %s103_s14 = scalar_lea.vmem %s20_s13, 512  ;;  %p108_p1 = scmp.lt.s32.totalorder %s20_s13, %s20_s13 }
   0x4   :  { %p104_p0 = scmp.ne.s32.totalorder %s20_s13, %s103_s14  ;;  %p109_p2 = scmp.lt.s32.totalorder %s103_s14, %s103_s14 }
   0x6   :  { %p110_p3 = por %p109_p2, %p108_p1 }
   0x8   :  { %p111_p4 = pnand %p110_p3, %p104_p0 }
   0xa   :  { %114 = shalt.err (!%p111_p4)
}
   0xb   :  { %s140_s15 = smov 128   ;;  %s141_s16 = smov 8  }
   0xc   :  { %25 = dma.hbm_to_vmem [thread:$0]  %s181_s2, 512, %s20_s13, [#allocation3], %s140_s15, %s140_s15, %s141_s16  }
   0xd   :  { %135 = dma.done.wait [#allocation3], 512  }
   0xe   :  { %136 = vsyncadd [#allocation3], 4294966784  ;;  %v142_v0 = vmov 0   ;;  %vm37_vm0 = vcmask 261120   ;;  %v29_v1 = vld [vmem:[%s179_s0] sm:$0xff]  ;;  %v31_v7 = vlaneseq  ;;  %vm55_vm2 = vcmask 7168  }
   0xf   :  { %90 = vset.pattern.permute.xlu0 %v142_v0  ;;  %v38_v2 = vsel %vm37_vm0, %v29_v1, -inf  ;;  %v30_v3 = vld [vmem:[%s180_s1] sm:$0xff]  ;;  %s143_s0 = smov [#allocation5]  }
  0x10   :  { %39 = vmax.xlane.f32.xlu0 %v38_v2  ;;  %v32_v8 = vand.u32 127, %v31_v7  ;;  %s74_s1 = sshll.u32 %s143_s0, 4  ;;  %s75_s1 = int_to_ptr.vmem [resolvable:$true] %s74_s1 }
  0x11   :  { %s115_s23 = scalar_lea.vmem %s75_s1, 128  ;;  %p120_p6 = scmp.lt.s32.totalorder %s75_s1, %s75_s1 }
  0x12   :  { %p116_p5 = scmp.ne.s32.totalorder %s75_s1, %s115_s23  ;;  %p121_p7 = scmp.lt.s32.totalorder %s115_s23, %s115_s23 }
  0x14   :  { %p122_p8 = por %p121_p7, %p120_p6 }
  0x16   :  { %p123_p9 = pnand %p122_p8, %p116_p5 }
  0x26   :  { %34 = vperm.xlu0 %90, %v30_v3  }
  0x99   :  { %v40_v4 = vpop.xlane.xlu0 %39 }
  0x9a   :  { %v41_v5 = vsub.f32 %v29_v1, %v40_v4 }
  0x9c   :  { %v42_v6 = vmul.f32 1.442695, %v41_v5 }
  0x9e   :  { %91 = vpow2.f32 %v42_v6 }
  0xa1   :  { %v35_v9 = vpop.permute.xlu0 %34 }
  0xa2   :  { %vm36_vm1 = vcmp.eq.s32.totalorder %v32_v8, %v35_v9 }
  0xa3   :  { %v50_v11 = vsel %vm36_vm1, %v29_v1, 0.0 }
  0xa4   :  { %v51_v13 = vsel %vm37_vm0, %v50_v11, 0.0 }
  0xab   :  { %v92_v10 = vpop.eup %91 }
  0xac   :  { %v44_v12 = vsel %vm37_vm0, %v92_v10, 0.0 }
  0xad   :  { %45 = vadd.xlane.f32.xlu1 %v44_v12 }
  0xb1   :  { %52 = vadd.xlane.f32.xlu1 %v51_v13 }
 0x136   :  { %v46_v14 = vpop.xlane.xlu1 %45 }
 0x137   :  { %93 = vlog2.f32 %v46_v14 }
 0x13a   :  { %v53_v17 = vpop.xlane.xlu1 %52 }
 0x144   :  { %v94_v15 = vpop.eup %93 }
 0x145   :  { %v48_v16 = vmul.f32 0.6931472, %v94_v15 }
 0x147   :  { %v49_v18 = vadd.f32 %v48_v16, %v40_v4 }
 0x149   :  { %v54_v19 = vsub.f32 %v49_v18, %v53_v17 }
 0x14b   :  { %v56_v20 = vsel %vm55_vm2, %v54_v19, 0.0 }
 0x14c   :  { %57 = vadd.xlane.f32.xlu1 %v56_v20 }
 0x1d5   :  { %v58_v21 = vpop.xlane.xlu1 %57 }
 0x1d6   :  { %v59_v22 = vrot.slane %v58_v21, 4 }
 0x1d8   :  { %v60_v23 = vadd.f32 %v59_v22, %v58_v21 }
 0x1da   :  { %v61_v24 = vrot.slane %v60_v23, 2 }
 0x1dc   :  { %v62_v25 = vadd.f32 %v61_v24, %v60_v23 }
 0x1de   :  { %v63_v26 = vrot.slane %v62_v25, 1 }
 0x1e0   :  { %v64_v27 = vadd.f32 %v63_v26, %v62_v25 }
 0x1e2   :  { %83 = vpush %v64_v27 }
 0x213   :  { %s84_s2 = spop %83 }
 0x214   :  { %v66_v28 = vstv %s84_s2 }
 0x215   :  { %67 = vst [vmem:[#allocation5] sm:$0xff] %v66_v28 }
 0x216   :  { %126 = shalt.err (!%p123_p9)
}
 0x217   :  { %77 = dma.vmem_to_hbm [thread:$0]  %s75_s1, 128, %s182_s3, [#allocation4]  }
 0x218   :  { %137 = dma.done.wait [#allocation4], 128  }
 0x219   :  { %138 = vsyncadd [#allocation4], 4294967168 }
 0x21a   :  { %81 = vsyncpa [#allocation3], 1 }
 0x21b   :  { %82 = vsyncpa [#allocation4], 1 }

</bundles_post_ra>
